<compile_context>
chip_gen: v7x
topology: tpu7x:2x2x1
jax: 0.10.0
libtpu: 0.0.40
codegen_flags: <defaults>
</compile_context>

<pallas_src>
import jax
import jax.numpy as jnp
from jax.experimental import pallas as pl
from jax.experimental.pallas import tpu as pltpu


def _choose_images_per_step(N, S, max_lanes=8192):
    """Largest divisor of N that still leaves >= 2 grid steps (keeps both v7x
    TensorCores fed) while capping the per-step lane width."""
    if N < 2:
        return 1
    best = 1
    for b in range(1, N // 2 + 1):
        if N % b == 0 and b * S <= max_lanes:
            best = b
    return best


def _edge_mask_table(H, W, KH, KW):
    """(KH*KW, H*W) table of 0.0/1.0 multipliers implementing the implicit
    zero padding for each tap.  Computed once in the wrapper (not per step)."""
    S = H * W
    p = jnp.arange(S, dtype=jnp.int32)
    col = p % W
    row = p // W
    rows = []
    for kh in range(KH):
        for kw in range(KW):
            m = jnp.ones((S,), jnp.float32)
            if kh == 0:
                m = m * (row != 0).astype(jnp.float32)
            if kh == KH - 1:
                m = m * (row != H - 1).astype(jnp.float32)
            if kw == 0:
                m = m * (col != 0).astype(jnp.float32)
            if kw == KW - 1:
                m = m * (col != W - 1).astype(jnp.float32)
            rows.append(m)
    return jnp.stack(rows, axis=0)


def _make_conv_prelu_kernel(H, W, KH, KW, Cin, Cout, L, mxu_dtype=jnp.bfloat16):
    """Kernel closed over static geometry.  Operates on a (Cin, L) lane slab
    holding one or more whole images (L = images_per_step * H * W)."""
    assert KH == 3 and KW == 3, "tap shifts / masks assume 3x3, padding=1"

    # (kh, kw) tap -> flattened-lane shift d: out[p] reads x[p + d].
    taps = [(kh, kw, (kh - KH // 2) * W + (kw - KW // 2))
            for kh in range(KH) for kw in range(KW)]

    def kernel(x_ref, m_ref, w_ref, b_ref, a_ref, o_ref):
        # x_ref: (Cin, L) input slab (batch folded into lanes)
        # m_ref: (KH*KW, L) f32 0/1 zero-padding masks (constant index_map)
        # w_ref: (KH*KW, Cout, Cin) bf16 per-tap weights (constant index_map)
        # b_ref: (Cout, 1) f32 bias
        # a_ref: (1,) f32 in SMEM   PReLU slope (single shared parameter)
        # o_ref: (Cout, L) output slab
        x = x_ref[...]
        acc = jnp.zeros((Cout, L), jnp.float32)
        for t, (kh, kw, d) in enumerate(taps):
            # shifted[:, p] = x[:, p + d]; wrap-around lanes land on padded
            # (masked-to-zero) positions, so the roll is safe.
            shifted = x if d == 0 else pltpu.roll(x, shift=(-d) % L, axis=1)
            if not (kh == KH // 2 and kw == KW // 2):
                shifted = shifted * m_ref[pl.ds(t, 1), :]   # implicit zero pad
            # One small MXU contraction per tap (no 9-way concat), f32 accum.
            acc = acc + jnp.dot(w_ref[t], shifted.astype(mxu_dtype),
                                preferred_element_type=jnp.float32)
        acc = acc + b_ref[...]                              # lane-broadcast bias
        alpha = a_ref[0]                                    # SMEM scalar
        o_ref[...] = jnp.where(acc >= 0, acc, alpha * acc).astype(o_ref.dtype)

    return kernel


def conv_block_forward(x_nchw, weight, bias, alpha,
                       images_per_step=None, mxu_dtype=jnp.bfloat16):
    """weight: (Cout, Cin, KH, KW) torch layout; x_nchw: (N, Cin, H, W)."""
    N, Cin, H, W = x_nchw.shape
    Cout, Cin_w, KH, KW = weight.shape
    assert Cin_w == Cin
    S = H * W
    if images_per_step is None:
        images_per_step = _choose_images_per_step(N, S)
    B = images_per_step
    assert N % B == 0
    L = B * S

    # Fold weights to (KH*KW, Cout, Cin), bf16 for the MXU.
    w_taps = (jnp.transpose(weight, (2, 3, 0, 1))
              .reshape(KH * KW, Cout, Cin).astype(mxu_dtype))
    b2 = bias.reshape(Cout, 1).astype(jnp.float32)
    a1 = jnp.asarray(alpha, jnp.float32).reshape(1)
    masks = _edge_mask_table(H, W, KH, KW)                  # (9, S)
    if B > 1:
        masks = jnp.tile(masks, (1, B))                     # (9, L)

    kernel = _make_conv_prelu_kernel(H, W, KH, KW, Cin, Cout, L, mxu_dtype)
    cparams = pltpu.CompilerParams(
        dimension_semantics=("parallel",),
        vmem_limit_bytes=32 * 1024 * 1024,
    )
    const_specs = [
        pl.BlockSpec((KH * KW, L), lambda g: (0, 0)),            # masks
        pl.BlockSpec((KH * KW, Cout, Cin), lambda g: (0, 0, 0)),  # weights
        pl.BlockSpec((Cout, 1), lambda g: (0, 0)),                # bias
        pl.BlockSpec(memory_space=pltpu.MemorySpace.SMEM),        # alpha
    ]

    if B == 1:
        # One image per step: keep NCHW, no wrapper transpose (free reshapes).
        x_in = x_nchw.reshape(N, Cin, S)
        out = pl.pallas_call(
            kernel,
            out_shape=jax.ShapeDtypeStruct((N, Cout, S), x_nchw.dtype),
            grid_spec=pltpu.PrefetchScalarGridSpec(
                num_scalar_prefetch=0,
                grid=(N,),
                in_specs=[pl.BlockSpec((None, Cin, S), lambda g: (g, 0, 0))]
                + const_specs,
                out_specs=pl.BlockSpec((None, Cout, S), lambda g: (g, 0, 0)),
            ),
            compiler_params=cparams,
        )(x_in, masks, w_taps, b2, a1)
        return out.reshape(N, Cout, H, W)

    # B > 1: fold B whole images into the lane axis (one wrapper transpose),
    # shrinking the grid to N//B steps and widening the MXU lane dim to B*S.
    x_in = jnp.transpose(x_nchw.reshape(N, Cin, S), (1, 0, 2)).reshape(Cin, N * S)
    out = pl.pallas_call(
        kernel,
        out_shape=jax.ShapeDtypeStruct((Cout, N * S), x_nchw.dtype),
        grid_spec=pltpu.PrefetchScalarGridSpec(
            num_scalar_prefetch=0,
            grid=(N // B,),
            in_specs=[pl.BlockSpec((Cin, L), lambda g: (0, g))] + const_specs,
            out_specs=pl.BlockSpec((Cout, L), lambda g: (0, g)),
        ),
        compiler_params=cparams,
    )(x_in, masks, w_taps, b2, a1)
    out = jnp.transpose(out.reshape(Cout, N, S), (1, 0, 2))
    return out.reshape(N, Cout, H, W)


def reference_forward(x_nchw, weight, bias, alpha, mxu_dtype=None):
    if mxu_dtype is not None:   # match the kernel's MXU operand rounding
        x_nchw = x_nchw.astype(mxu_dtype).astype(jnp.float32)
        weight = weight.astype(mxu_dtype).astype(jnp.float32)
    y = jax.lax.conv_general_dilated(
        x_nchw, weight, window_strides=(1, 1),
        padding=[(1, 1), (1, 1)],
        dimension_numbers=("NCHW", "OIHW", "NCHW"))
    y = y + bias.reshape(1, -1, 1, 1)
    return jnp.where(y >= 0, y, alpha * y)


if __name__ == "__main__":
    key = jax.random.PRNGKey(0)
    k1, k2, k3 = jax.random.split(key, 3)

    N, Cin, H, W = 2, 4, 16, 16
    Cout, KH, KW = 8, 3, 3

    x = jax.random.normal(k1, (N, Cin, H, W), jnp.float32)
    # Deterministic synthetic parameters matching ConvBlock.__init__ shapes.
    weight = 0.1 * jax.random.normal(k2, (Cout, Cin, KH, KW), jnp.float32)
    bias = 0.1 * jax.random.normal(k3, (Cout,), jnp.float32)
    alpha = 0.5  # PReLU(init=0.5), single shared slope

    # Main test (N=2 -> one image/step, two parallel grid steps).
    out = jax.block_until_ready(conv_block_forward(x, weight, bias, alpha))
    assert out.shape == (N, Cout, H, W)
    ref_rounded = reference_forward(x, weight, bias, alpha, mxu_dtype=jnp.bfloat16)
    ref_f32 = reference_forward(x, weight, bias, alpha)
    assert jnp.allclose(out, ref_rounded, atol=1e-4, rtol=1e-4), \
        "mismatch vs bf16-operand reference"
    assert jnp.allclose(out, ref_f32, atol=5e-2, rtol=5e-2), \
        "mismatch vs f32 reference"

    # Also exercise the batched path (N=4 -> 2 images folded into lanes/step).
    k4, _ = jax.random.split(k1)
    x4 = jax.random.normal(k4, (4, Cin, H, W), jnp.float32)
    out4 = jax.block_until_ready(conv_block_forward(x4, weight, bias, alpha))
    ref4 = reference_forward(x4, weight, bias, alpha, mxu_dtype=jnp.bfloat16)
    assert out4.shape == (4, Cout, H, W)
    assert jnp.allclose(out4, ref4, atol=1e-4, rtol=1e-4), \
        "mismatch vs reference (batched lane-fold path)"

    print("KERNEL_OK")
</pallas_src>

<mosaic_0001>
module attributes {stable_mosaic.version = 11 : i64} {
  func.func @kernel(%arg0: i32, %arg1: memref<1x4x256xf32, #tpu.memory_space<vmem>>, %arg2: memref<9x256xf32, #tpu.memory_space<vmem>>, %arg3: memref<9x8x4xbf16, #tpu.memory_space<vmem>>, %arg4: memref<8x1xf32, #tpu.memory_space<vmem>>, %arg5: memref<1xf32, #tpu.memory_space<smem>>, %arg6: memref<1x8x256xf32, #tpu.memory_space<vmem>>) attributes {dimension_semantics = [#tpu.dimension_semantics<parallel>], iteration_bounds = array<i64: 2>, scalar_prefetch = 0 : i64, scratch_operands = 0 : i64, tpu.core_type = #tpu.core_type<tc>, window_params = [{transform_indices = @transform_0, window_bounds = array<i64: 1, 4, 256>}, {pipeline_mode = #tpu.pipeline_mode<synchronous>, transform_indices = @transform_1, window_bounds = array<i64: 9, 256>}, {pipeline_mode = #tpu.pipeline_mode<synchronous>, transform_indices = @transform_2, window_bounds = array<i64: 9, 8, 4>}, {pipeline_mode = #tpu.pipeline_mode<synchronous>, transform_indices = @transform_3, window_bounds = array<i64: 8, 1>}, {transform_indices = @transform_4, window_bounds = array<i64: 1>}, {transform_indices = @transform_5, window_bounds = array<i64: 1, 8, 256>}]} {
    %c0 = arith.constant 0 : index
    %c0_0 = arith.constant 0 : index
    %c0_1 = arith.constant 0 : index
    %0 = vector.load %arg1[%c0, %c0_0, %c0_1] : memref<1x4x256xf32, #tpu.memory_space<vmem>>, vector<1x4x256xf32>
    %1 = vector.shape_cast %0 : vector<1x4x256xf32> to vector<4x256xf32>
    %cst = arith.constant 0.000000e+00 : f32
    %2 = vector.broadcast %cst : f32 to vector<8x256xf32>
    %c17_i32 = arith.constant 17 : i32
    %3 = tpu.dynamic_rotate %1 by %c17_i32 dim 1 : vector<4x256xf32>, i32 -> vector<4x256xf32>
    %c0_2 = arith.constant 0 : index
    %c0_3 = arith.constant 0 : index
    %4 = vector.load %arg2[%c0_2, %c0_3] : memref<9x256xf32, #tpu.memory_space<vmem>>, vector<1x256xf32>
    %5 = vector.broadcast %4 : vector<1x256xf32> to vector<4x256xf32>
    %6 = arith.mulf %3, %5 : vector<4x256xf32>
    %c0_4 = arith.constant 0 : index
    %c0_5 = arith.constant 0 : index
    %c0_6 = arith.constant 0 : index
    %7 = vector.load %arg3[%c0_4, %c0_5, %c0_6] : memref<9x8x4xbf16, #tpu.memory_space<vmem>>, vector<1x8x4xbf16>
    %8 = vector.shape_cast %7 : vector<1x8x4xbf16> to vector<8x4xbf16>
    %9 = arith.truncf %6 : vector<4x256xf32> to vector<4x256xbf16>
    %cst_7 = arith.constant dense<0.000000e+00> : vector<8x256xf32>
    %10 = tpu.matmul %8, %9, %cst_7 {dimension_numbers = #tpu.dot_dimension_numbers<[1], [0], [0], [1], [0, 0, 1, 1], [], []>} : vector<8x4xbf16>, vector<4x256xbf16>, vector<8x256xf32> -> vector<8x256xf32>
    %11 = arith.addf %2, %10 : vector<8x256xf32>
    %c16_i32 = arith.constant 16 : i32
    %12 = tpu.dynamic_rotate %1 by %c16_i32 dim 1 : vector<4x256xf32>, i32 -> vector<4x256xf32>
    %c1 = arith.constant 1 : index
    %c0_8 = arith.constant 0 : index
    %13 = vector.load %arg2[%c1, %c0_8] : memref<9x256xf32, #tpu.memory_space<vmem>>, vector<1x256xf32>
    %14 = vector.broadcast %13 : vector<1x256xf32> to vector<4x256xf32>
    %15 = arith.mulf %12, %14 : vector<4x256xf32>
    %c1_9 = arith.constant 1 : index
    %c0_10 = arith.constant 0 : index
    %c0_11 = arith.constant 0 : index
    %16 = vector.load %arg3[%c1_9, %c0_10, %c0_11] : memref<9x8x4xbf16, #tpu.memory_space<vmem>>, vector<1x8x4xbf16>
    %17 = vector.shape_cast %16 : vector<1x8x4xbf16> to vector<8x4xbf16>
    %18 = arith.truncf %15 : vector<4x256xf32> to vector<4x256xbf16>
    %cst_12 = arith.constant dense<0.000000e+00> : vector<8x256xf32>
    %19 = tpu.matmul %17, %18, %cst_12 {dimension_numbers = #tpu.dot_dimension_numbers<[1], [0], [0], [1], [0, 0, 1, 1], [], []>} : vector<8x4xbf16>, vector<4x256xbf16>, vector<8x256xf32> -> vector<8x256xf32>
    %20 = arith.addf %11, %19 : vector<8x256xf32>
    %c15_i32 = arith.constant 15 : i32
    %21 = tpu.dynamic_rotate %1 by %c15_i32 dim 1 : vector<4x256xf32>, i32 -> vector<4x256xf32>
    %c2 = arith.constant 2 : index
    %c0_13 = arith.constant 0 : index
    %22 = vector.load %arg2[%c2, %c0_13] : memref<9x256xf32, #tpu.memory_space<vmem>>, vector<1x256xf32>
    %23 = vector.broadcast %22 : vector<1x256xf32> to vector<4x256xf32>
    %24 = arith.mulf %21, %23 : vector<4x256xf32>
    %c2_14 = arith.constant 2 : index
    %c0_15 = arith.constant 0 : index
    %c0_16 = arith.constant 0 : index
    %25 = vector.load %arg3[%c2_14, %c0_15, %c0_16] : memref<9x8x4xbf16, #tpu.memory_space<vmem>>, vector<1x8x4xbf16>
    %26 = vector.shape_cast %25 : vector<1x8x4xbf16> to vector<8x4xbf16>
    %27 = arith.truncf %24 : vector<4x256xf32> to vector<4x256xbf16>
    %cst_17 = arith.constant dense<0.000000e+00> : vector<8x256xf32>
    %28 = tpu.matmul %26, %27, %cst_17 {dimension_numbers = #tpu.dot_dimension_numbers<[1], [0], [0], [1], [0, 0, 1, 1], [], []>} : vector<8x4xbf16>, vector<4x256xbf16>, vector<8x256xf32> -> vector<8x256xf32>
    %29 = arith.addf %20, %28 : vector<8x256xf32>
    %c1_i32 = arith.constant 1 : i32
    %30 = tpu.dynamic_rotate %1 by %c1_i32 dim 1 : vector<4x256xf32>, i32 -> vector<4x256xf32>
    %c3 = arith.constant 3 : index
    %c0_18 = arith.constant 0 : index
    %31 = vector.load %arg2[%c3, %c0_18] : memref<9x256xf32, #tpu.memory_space<vmem>>, vector<1x256xf32>
    %32 = vector.broadcast %31 : vector<1x256xf32> to vector<4x256xf32>
    %33 = arith.mulf %30, %32 : vector<4x256xf32>
    %c3_19 = arith.constant 3 : index
    %c0_20 = arith.constant 0 : index
    %c0_21 = arith.constant 0 : index
    %34 = vector.load %arg3[%c3_19, %c0_20, %c0_21] : memref<9x8x4xbf16, #tpu.memory_space<vmem>>, vector<1x8x4xbf16>
    %35 = vector.shape_cast %34 : vector<1x8x4xbf16> to vector<8x4xbf16>
    %36 = arith.truncf %33 : vector<4x256xf32> to vector<4x256xbf16>
    %cst_22 = arith.constant dense<0.000000e+00> : vector<8x256xf32>
    %37 = tpu.matmul %35, %36, %cst_22 {dimension_numbers = #tpu.dot_dimension_numbers<[1], [0], [0], [1], [0, 0, 1, 1], [], []>} : vector<8x4xbf16>, vector<4x256xbf16>, vector<8x256xf32> -> vector<8x256xf32>
    %38 = arith.addf %29, %37 : vector<8x256xf32>
    %c4 = arith.constant 4 : index
    %c0_23 = arith.constant 0 : index
    %c0_24 = arith.constant 0 : index
    %39 = vector.load %arg3[%c4, %c0_23, %c0_24] : memref<9x8x4xbf16, #tpu.memory_space<vmem>>, vector<1x8x4xbf16>
    %40 = vector.shape_cast %39 : vector<1x8x4xbf16> to vector<8x4xbf16>
    %41 = arith.truncf %1 : vector<4x256xf32> to vector<4x256xbf16>
    %cst_25 = arith.constant dense<0.000000e+00> : vector<8x256xf32>
    %42 = tpu.matmul %40, %41, %cst_25 {dimension_numbers = #tpu.dot_dimension_numbers<[1], [0], [0], [1], [0, 0, 1, 1], [], []>} : vector<8x4xbf16>, vector<4x256xbf16>, vector<8x256xf32> -> vector<8x256xf32>
    %43 = arith.addf %38, %42 : vector<8x256xf32>
    %c255_i32 = arith.constant 255 : i32
    %44 = tpu.dynamic_rotate %1 by %c255_i32 dim 1 : vector<4x256xf32>, i32 -> vector<4x256xf32>
    %c5 = arith.constant 5 : index
    %c0_26 = arith.constant 0 : index
    %45 = vector.load %arg2[%c5, %c0_26] : memref<9x256xf32, #tpu.memory_space<vmem>>, vector<1x256xf32>
    %46 = vector.broadcast %45 : vector<1x256xf32> to vector<4x256xf32>
    %47 = arith.mulf %44, %46 : vector<4x256xf32>
    %c5_27 = arith.constant 5 : index
    %c0_28 = arith.constant 0 : index
    %c0_29 = arith.constant 0 : index
    %48 = vector.load %arg3[%c5_27, %c0_28, %c0_29] : memref<9x8x4xbf16, #tpu.memory_space<vmem>>, vector<1x8x4xbf16>
    %49 = vector.shape_cast %48 : vector<1x8x4xbf16> to vector<8x4xbf16>
    %50 = arith.truncf %47 : vector<4x256xf32> to vector<4x256xbf16>
    %cst_30 = arith.constant dense<0.000000e+00> : vector<8x256xf32>
    %51 = tpu.matmul %49, %50, %cst_30 {dimension_numbers = #tpu.dot_dimension_numbers<[1], [0], [0], [1], [0, 0, 1, 1], [], []>} : vector<8x4xbf16>, vector<4x256xbf16>, vector<8x256xf32> -> vector<8x256xf32>
    %52 = arith.addf %43, %51 : vector<8x256xf32>
    %c241_i32 = arith.constant 241 : i32
    %53 = tpu.dynamic_rotate %1 by %c241_i32 dim 1 : vector<4x256xf32>, i32 -> vector<4x256xf32>
    %c6 = arith.constant 6 : index
    %c0_31 = arith.constant 0 : index
    %54 = vector.load %arg2[%c6, %c0_31] : memref<9x256xf32, #tpu.memory_space<vmem>>, vector<1x256xf32>
    %55 = vector.broadcast %54 : vector<1x256xf32> to vector<4x256xf32>
    %56 = arith.mulf %53, %55 : vector<4x256xf32>
    %c6_32 = arith.constant 6 : index
    %c0_33 = arith.constant 0 : index
    %c0_34 = arith.constant 0 : index
    %57 = vector.load %arg3[%c6_32, %c0_33, %c0_34] : memref<9x8x4xbf16, #tpu.memory_space<vmem>>, vector<1x8x4xbf16>
    %58 = vector.shape_cast %57 : vector<1x8x4xbf16> to vector<8x4xbf16>
    %59 = arith.truncf %56 : vector<4x256xf32> to vector<4x256xbf16>
    %cst_35 = arith.constant dense<0.000000e+00> : vector<8x256xf32>
    %60 = tpu.matmul %58, %59, %cst_35 {dimension_numbers = #tpu.dot_dimension_numbers<[1], [0], [0], [1], [0, 0, 1, 1], [], []>} : vector<8x4xbf16>, vector<4x256xbf16>, vector<8x256xf32> -> vector<8x256xf32>
    %61 = arith.addf %52, %60 : vector<8x256xf32>
    %c240_i32 = arith.constant 240 : i32
    %62 = tpu.dynamic_rotate %1 by %c240_i32 dim 1 : vector<4x256xf32>, i32 -> vector<4x256xf32>
    %c7 = arith.constant 7 : index
    %c0_36 = arith.constant 0 : index
    %63 = vector.load %arg2[%c7, %c0_36] : memref<9x256xf32, #tpu.memory_space<vmem>>, vector<1x256xf32>
    %64 = vector.broadcast %63 : vector<1x256xf32> to vector<4x256xf32>
    %65 = arith.mulf %62, %64 : vector<4x256xf32>
    %c7_37 = arith.constant 7 : index
    %c0_38 = arith.constant 0 : index
    %c0_39 = arith.constant 0 : index
    %66 = vector.load %arg3[%c7_37, %c0_38, %c0_39] : memref<9x8x4xbf16, #tpu.memory_space<vmem>>, vector<1x8x4xbf16>
    %67 = vector.shape_cast %66 : vector<1x8x4xbf16> to vector<8x4xbf16>
    %68 = arith.truncf %65 : vector<4x256xf32> to vector<4x256xbf16>
    %cst_40 = arith.constant dense<0.000000e+00> : vector<8x256xf32>
    %69 = tpu.matmul %67, %68, %cst_40 {dimension_numbers = #tpu.dot_dimension_numbers<[1], [0], [0], [1], [0, 0, 1, 1], [], []>} : vector<8x4xbf16>, vector<4x256xbf16>, vector<8x256xf32> -> vector<8x256xf32>
    %70 = arith.addf %61, %69 : vector<8x256xf32>
    %c239_i32 = arith.constant 239 : i32
    %71 = tpu.dynamic_rotate %1 by %c239_i32 dim 1 : vector<4x256xf32>, i32 -> vector<4x256xf32>
    %c8 = arith.constant 8 : index
    %c0_41 = arith.constant 0 : index
    %72 = vector.load %arg2[%c8, %c0_41] : memref<9x256xf32, #tpu.memory_space<vmem>>, vector<1x256xf32>
    %73 = vector.broadcast %72 : vector<1x256xf32> to vector<4x256xf32>
    %74 = arith.mulf %71, %73 : vector<4x256xf32>
    %c8_42 = arith.constant 8 : index
    %c0_43 = arith.constant 0 : index
    %c0_44 = arith.constant 0 : index
    %75 = vector.load %arg3[%c8_42, %c0_43, %c0_44] : memref<9x8x4xbf16, #tpu.memory_space<vmem>>, vector<1x8x4xbf16>
    %76 = vector.shape_cast %75 : vector<1x8x4xbf16> to vector<8x4xbf16>
    %77 = arith.truncf %74 : vector<4x256xf32> to vector<4x256xbf16>
    %cst_45 = arith.constant dense<0.000000e+00> : vector<8x256xf32>
    %78 = tpu.matmul %76, %77, %cst_45 {dimension_numbers = #tpu.dot_dimension_numbers<[1], [0], [0], [1], [0, 0, 1, 1], [], []>} : vector<8x4xbf16>, vector<4x256xbf16>, vector<8x256xf32> -> vector<8x256xf32>
    %79 = arith.addf %70, %78 : vector<8x256xf32>
    %c0_46 = arith.constant 0 : index
    %c0_47 = arith.constant 0 : index
    %80 = vector.load %arg4[%c0_46, %c0_47] : memref<8x1xf32, #tpu.memory_space<vmem>>, vector<8x1xf32>
    %81 = vector.broadcast %80 : vector<8x1xf32> to vector<8x256xf32>
    %82 = arith.addf %79, %81 : vector<8x256xf32>
    %c0_48 = arith.constant 0 : index
    %83 = memref.load %arg5[%c0_48] : memref<1xf32, #tpu.memory_space<smem>>
    %cst_49 = arith.constant 0.000000e+00 : f32
    %84 = vector.broadcast %cst_49 : f32 to vector<8x256xf32>
    %85 = arith.cmpf oge, %82, %84 : vector<8x256xf32>
    %86 = vector.broadcast %83 : f32 to vector<8x256xf32>
    %87 = arith.mulf %86, %82 : vector<8x256xf32>
    %88 = arith.select %85, %82, %87 : vector<8x256xi1>, vector<8x256xf32>
    %c0_50 = arith.constant 0 : index
    %c0_51 = arith.constant 0 : index
    %c0_52 = arith.constant 0 : index
    %89 = vector.load %arg6[%c0_50, %c0_51, %c0_52] : memref<1x8x256xf32, #tpu.memory_space<vmem>>, vector<1x8x256xf32>
    %90 = vector.shape_cast %89 : vector<1x8x256xf32> to vector<8x256xf32>
    %91 = vector.shape_cast %88 : vector<8x256xf32> to vector<1x8x256xf32>
    tpu.vector_store %arg6[%c0_50, %c0_51, %c0_52], %91 {strides = array<i32>} : memref<1x8x256xf32, #tpu.memory_space<vmem>>, vector<1x8x256xf32>,
    return
  }
  func.func @transform_0(%arg0: i32) -> (i32, i32, i32) {
    %c0_i32 = arith.constant 0 : i32
    %c0_i32_0 = arith.constant 0 : i32
    %c0_i32_1 = arith.constant 0 : i32
    return %arg0, %c0_i32, %c0_i32_0 : i32, i32, i32
  }
  func.func @transform_1(%arg0: i32) -> (i32, i32) {
    %c0_i32 = arith.constant 0 : i32
    %c0_i32_0 = arith.constant 0 : i32
    %c0_i32_1 = arith.constant 0 : i32
    return %c0_i32, %c0_i32_0 : i32, i32
  }
  func.func @transform_2(%arg0: i32) -> (i32, i32, i32) {
    %c0_i32 = arith.constant 0 : i32
    %c0_i32_0 = arith.constant 0 : i32
    %c0_i32_1 = arith.constant 0 : i32
    %c0_i32_2 = arith.constant 0 : i32
    return %c0_i32, %c0_i32_0, %c0_i32_1 : i32, i32, i32
  }
  func.func @transform_3(%arg0: i32) -> (i32, i32) {
    %c0_i32 = arith.constant 0 : i32
    %c0_i32_0 = arith.constant 0 : i32
    %c0_i32_1 = arith.constant 0 : i32
    return %c0_i32, %c0_i32_0 : i32, i32
  }
  func.func @transform_4(%arg0: i32) -> i32 {
    %c0_i32 = arith.constant 0 : i32
    %c0_i32_0 = arith.constant 0 : i32
    return %c0_i32 : i32
  }
  func.func @transform_5(%arg0: i32) -> (i32, i32, i32) {
    %c0_i32 = arith.constant 0 : i32
    %c0_i32_0 = arith.constant 0 : i32
    %c0_i32_1 = arith.constant 0 : i32
    return %arg0, %c0_i32, %c0_i32_0 : i32, i32, i32
  }
}

</mosaic_0001>

<bundles_post_ra>
// kernel: tpu_custom_call.1
= control target key start
LH: loop header
LB: loop body
LE: loop exit
PB: predicated region body
PF: predicated region fallthrough
CT: control target
= control target key end

     0   :  { %s1470_s0 = inlined_call_operand.vmem [shape: f32[2,4,256], index: 0, kind: input, shape index: {}]   ;;  %s1471_s1 = inlined_call_operand.vmem [shape: f32[9,256], index: 1, kind: input, shape index: {}]   ;;  %s1472_s2 = inlined_call_operand.vmem [shape: bf16[9,8,4], index: 2, kind: input, shape index: {}]   ;;  %s1473_s3 = inlined_call_operand.vmem [shape: f32[8,1], index: 3, kind: input, shape index: {}]   ;;  %s1474_s4 = inlined_call_operand.<no memory space> [shape: f32[1], index: 4, kind: input, shape index: {}]   ;;  %s1475_s5 = inlined_call_operand.hbm [shape: f32[2,8,256], index: 5, kind: output, shape index: {}]  }
   0x1   :  { %10 = sst [smem:[#allocation2]] %s1474_s4 }
   0x2   :  { %11 = vsyncpa [#allocation4], 0 }
   0x3   :  { %13 = vsyncpa [#allocation4 + $0x1], 0  ;;  %s1203_s20 = smov 0   ;;  %s1205_s21 = smov 0  }
   0x4   :  { %s1207_s22 = smov 0   ;;  %s1209_s23 = smov 0  }
   0x5 LB: > { %s1224_s4 = sadd.s32 4294967295, %s1158_s23   ;;  %s999_s24 = sadd.s32 4294967294, %s1158_s23   ;;  %s1158_s23 = sphi %s1209_s23, %s1481_s23   ;;  %s1154_s22 = sphi %s1207_s22, %s1480_s22   ;;  %s1150_s21 = sphi %s1205_s21, %s1479_s21   ;;  %s1146_s20 = sphi %s1203_s20, %s1478_s20  }
   0x6   : > { %s1228_s25 = sadd.s32 1, %s1158_s23   ;;  %s136_s26 = sadd.s32 1, %s1154_s22 }
   0x7   : > { %s133_s27 = ssub.s32 %s1158_s23, %s1228_s25  ;;  %p146_p0 = scmp.ne.s32.totalorder %s1154_s22, %s1150_s21 }
   0x8   : > { %p134_p1 = scmp.eq.s32.totalorder %s133_s27, 0  ;;  %p147_p2 = scmp.eq.s32.totalorder %s1224_s4, 1 }
   0x9   : > { %p152_p3 = scmp.ne.s32.totalorder %s1150_s21, %s1146_s20  ;;  %p153_p4 = scmp.eq.s32.totalorder %s999_s24, 1 }
   0xa   : > { %s1239_s28 = scalar_select %p134_p1, %s1154_s22, %s136_s26  }
   0xb   : > { %p1241_p5 = por %p147_p2, %p146_p0  ;;  %p1245_p6 = por %p153_p4, %p152_p3 }
   0xc   : > { %p1002_p7 = scmp.ge.s32.totalorder %s1158_s23, 1  ;;  %p191_p8 = scmp.lt.s32.totalorder %s1158_s23, 3 }
   0xe   : > { %p192_p9 = pnand %p1002_p7, %p191_p8 }
   0xf   : > { %p219_p10 = scmp.lt.s32.totalorder (!%p192_p9), %s1224_s4, 1  ;;  %v1160_v1 = vmov (!%p192_p9), 0   ;;  %s1161_s11 = smov (!%p192_p9), 17   ;;  %v907_v3 = vld [vmem:[%s1473_s3] sm:$0xff] (!%p192_p9)  ;;  %v233_v4 = vlaneseq (!%p192_p9)  ;;  %vm285_vm3 = vcmask (!%p192_p9), 1041408   ;;  %vm281_vm5 = vcmask (!%p192_p9), 31744  }
  0x10   : > { %195 = sbr.rel (%p192_p9) target bundleno = 422 (0x1a6), region = 40  ;;  %324 = vmatprep.mubr.bf16.mxu0 (!%p192_p9), %v1160_v1  ;;  %s1162_s12 = smov (!%p192_p9), 16   ;;  %374 = vmatprep.mubr.bf16.mxu1 (!%p192_p9), %v1160_v1  ;;  %v238_v9 = vld [vmem:[%s1471_s1] ss:$8 sm:$0x3] (!%p192_p9) }
  0x11   : > { %1094 = vset.pattern.permute.xlu0 (!%p192_p9), %v1160_v1  ;;  %s1163_s13 = smov (!%p192_p9), 15   ;;  %s1164_s14 = smov (!%p192_p9), 1   ;;  %v241_v5 = vshrl.u32 (!%p192_p9), %v233_v4, 7  ;;  %v1284_v6 = vand.u32 (!%p192_p9), 127, %v233_v4  ;;  %v252_v46 = vld [vmem:[%s1472_s2] sm:$0xf] (!%p192_p9) }
  0x12   : > { %s1165_s15 = smov (!%p192_p9), 127   ;;  %s1166_s16 = smov (!%p192_p9), 113   ;;  %v1006_v10 = vld [vmem:[%s1471_s1 + $0x1] ss:$8 sm:$0x3] (!%p192_p9) }
  0x13   : > { %s1167_s17 = smov (!%p192_p9), 112   ;;  %s1168_s18 = smov (!%p192_p9), 111   ;;  %v1286_v7 = vsub.s32 (!%p192_p9), 0, %v241_v5  ;;  %v1288_v8 = vsub.s32 (!%p192_p9), 1, %v241_v5  ;;  %vm235_vm0 = vcmp.lt.s32.totalorder (!%p192_p9), %v1284_v6, 17  ;;  %vm259_vm1 = vcmp.lt.s32.totalorder (!%p192_p9), %v1284_v6, 16 }
  0x14   : > { %v1012_v13 = vld [vmem:[%s1471_s1 + $0x2] ss:$8 sm:$0x3] (!%p192_p9)  ;;  %vm387_vm2 = vcmp.lt.s32.totalorder (!%p192_p9), %v1284_v6, 15  ;;  %vm465_vm4 = vcmp.lt.s32.totalorder (!%p192_p9), %v1284_v6, 1  ;;  %vm599_vm6 = vcmp.lt.s32.totalorder (!%p192_p9), %v1284_v6, 127 }
  0x15   : > { %v243_v14 = vrot.slane (!%p192_p9), %v238_v9, %v1286_v7  ;;  %v268_v15 = vrot.slane (!%p192_p9), %v1006_v10, %v1286_v7  ;;  %v272_v16 = vrot.slane (!%p192_p9), %v1006_v10, %v1288_v8  ;;  %v247_v17 = vrot.slane (!%p192_p9), %v238_v9, %v1288_v8  ;;  %v1016_v30 = vld [vmem:[%s1471_s1 + $0x3] ss:$8 sm:$0x3] (!%p192_p9)  ;;  %v1023_v45 = vld [vmem:[%s1471_s1 + $0x5] ss:$8 sm:$0x3] (!%p192_p9) }
  0x16   : > { %v396_v20 = vrot.slane (!%p192_p9), %v1012_v13, %v1286_v7  ;;  %v400_v21 = vrot.slane (!%p192_p9), %v1012_v13, %v1288_v8  ;;  %v474_v39 = vrot.slane (!%p192_p9), %v1016_v30, %v1286_v7  ;;  %v478_v40 = vrot.slane (!%p192_p9), %v1016_v30, %v1288_v8  ;;  %v1007_v47 = vld [vmem:[%s1472_s2 + $0x4] sm:$0xf] (!%p192_p9)  ;;  %s915_s26 = sld [smem:[#allocation2]] (!%p192_p9)  ;;  %s216_s27 = sand.u32 (!%p192_p9), 1, %s1150_s21  }
  0x17   : > { %s220_s6 = scalar_select %p219_p10, %s1224_s4, 1  ;;  %v608_v54 = vrot.slane %v1023_v45, %v1286_v7  ;;  %v612_v59 = vrot.slane %v1023_v45, %v1288_v8  ;;  %v1027_v60 = vld [vmem:[%s1471_s1 + $0x6] ss:$8 sm:$0x3]  ;;  %vm677_vm7 = vcmp.lt.s32.totalorder %v1284_v6, 113  ;;  %vm755_vm8 = vcmp.lt.s32.totalorder %v1284_v6, 112 }
  0x18   : > { %v686_v9 = vrot.slane %v1027_v60, %v1286_v7  ;;  %v1031_v13 = vld [vmem:[%s1471_s1 + $0x7] ss:$8 sm:$0x3]  ;;  %vm833_vm9 = vcmp.lt.s32.totalorder %v1284_v6, 111 }
  0x19   : > { %s1044_s7 = sshll.u32 %s220_s6, 3  ;;  %s1003_s6 = sshll.u32 %s216_s27, 4 }
  0x1a   : > { %s223_s10 = scalar_lea.vmem %s1470_s0, %s1044_s7  ;;  %s1045_s7 = sshll.u32 %s1224_s4, 8 }
  0x1b   : > { %v1256_v0 = vld [vmem:[%s223_s10] sm:$0xff]  ;;  %s218_s8 = scalar_lea.vmem [#allocation3], %s1003_s6  ;;  %s926_s4 = scalar_lea.sflag [#allocation4], %s216_s27 }
  0x1c   : > { %229 = vrot.lane.b32.xlu1 %v1256_v0, %s1161_s11  ;;  %255 = vrot.lane.b32.xlu0 %v1256_v0, %s1162_s12  ;;  %v1263_v2 = vcombine.high %v1256_v0, %v1256_v0  ;;  %s940_s9 = sshll.u32 %s218_s8, 4  ;;  %s1430_s9 = int_to_ptr.vmem [resolvable:$true] %s940_s9 }
  0x1e   : > { %v542_v55 = vpack.c.bf16 %v1263_v2, %v1263_v2 }
  0x20   : > { %231 = vrot.lane.b32.xlu1 %v1263_v2, %s1161_s11  ;;  %257 = vrot.lane.b32.xlu0 %v1263_v2, %s1162_s12  ;;  %s1428_s12 = scalar_lea.hbm %s1475_s5, %s1045_s7 }
  0x24   : > { %385 = vrot.lane.b32.xlu1 %v1263_v2, %s1163_s13  ;;  %383 = vrot.lane.b32.xlu0 %v1256_v0, %s1163_s13  ;;  %s1096_s13 = scalar_lea.vmem %s1430_s9, 256 }
  0x25   : > { %p1097_p11 = scmp.ne.s32.totalorder %s1430_s9, %s1096_s13 }
  0x27   : > { %p1098_p12 = pnand %p1097_p11, %p1241_p5 }
  0x28   : > { %463 = vrot.lane.b32.xlu1 %v1263_v2, %s1164_s14  ;;  %461 = vrot.lane.b32.xlu0 %v1256_v0, %s1164_s14  ;;  %s1169_s14 = smov [#allocation3]  }
  0x29   : > { %p1099_p13 = pneg %p1098_p12 }
  0x2c   : > { %597 = vrot.lane.b32.xlu1 %v1263_v2, %s1165_s15  ;;  %595 = vrot.lane.b32.xlu0 %v1256_v0, %s1165_s15  ;;  %s1100_s15 = sshll.u32 %s1169_s14, 4  ;;  %s1101_s15 = int_to_ptr.vmem [resolvable:$false] %s1100_s15 }
  0x2d   : > { %p1103_p0 = scmp.lt.s32.totalorder %s1430_s9, %s1101_s15 }
  0x30   : > { %675 = vrot.lane.b32.xlu1 %v1263_v2, %s1166_s16  ;;  %673 = vrot.lane.b32.xlu0 %v1256_v0, %s1166_s16  ;;  %s1102_s16 = scalar_lea.vmem %s1101_s15, 512 }
  0x31   : > { %p1104_p1 = scmp.lt.s32.totalorder %s1102_s16, %s1096_s13 }
  0x33   : > { %p1105_p2 = por %p1104_p1, %p1103_p0 }
  0x34   : > { %753 = vrot.lane.b32.xlu1 %v1263_v2, %s1167_s17  ;;  %751 = vrot.lane.b32.xlu0 %v1256_v0, %s1167_s17 }
  0x35   : > { %p1106_p3 = pnand %p1105_p2, %p1099_p13 }
  0x38   : > { %831 = vrot.lane.b32.xlu1 %v1263_v2, %s1168_s18  ;;  %829 = vrot.lane.b32.xlu0 %v1256_v0, %s1168_s18 }
  0x3c   : > { %910 = vperm.xlu0 %1094, %v907_v3   ;;  %v541_v3 = vpack.c.bf16 %v1256_v0, %v1256_v0  ;;  %v690_v0 = vrot.slane %v1027_v60, %v1288_v8 }
  0x8e   : > { %v230_v11 = vpop.permute.xlu1 %229  ;;  %v256_v12 = vpop.permute.xlu0 %255 }
  0x92   : > { %v232_v18 = vpop.permute.xlu1 %231  ;;  %v258_v19 = vpop.permute.xlu0 %257 }
  0x93   : > { %v236_v22 = vsel %vm235_vm0, %v230_v11, %v232_v18  ;;  %v237_v23 = vsel %vm235_vm0, %v232_v18, %v230_v11  ;;  %v260_v24 = vsel %vm259_vm1, %v256_v12, %v258_v19  ;;  %v261_v25 = vsel %vm259_vm1, %v258_v19, %v256_v12 }
  0x94   : > { %v250_v26 = vmul.f32 %v243_v14, %v237_v23  ;;  %v275_v27 = vmul.f32 %v268_v15, %v261_v25  ;;  %v276_v28 = vmul.f32 %v272_v16, %v260_v24  ;;  %v251_v29 = vmul.f32 %v247_v17, %v236_v22  ;;  %v1013_v14 = vld [vmem:[%s1472_s2 + $0x8] sm:$0xf]  ;;  %v1017_v15 = vld [vmem:[%s1472_s2 + $0xc] sm:$0xf] }
  0x95   : > { %v547_v18 = vsel %vm285_vm3, %v541_v3, 0  ;;  %v764_v23 = vrot.slane %v1031_v13, %v1286_v7 }
  0x96   : > { %v386_v31 = vpop.permute.xlu1 %385  ;;  %v384_v32 = vpop.permute.xlu0 %383  ;;  %v280_v33 = vpack.c.bf16 %v276_v28, %v276_v28  ;;  %v254_v34 = vpack.c.bf16 %v251_v29, %v251_v29  ;;  %v279_v35 = vpack.c.bf16 %v275_v27, %v275_v27  ;;  %v253_v36 = vpack.c.bf16 %v250_v26, %v250_v26  ;;  %v1035_v28 = vld [vmem:[%s1471_s1 + $0x10] ss:$8 sm:$0x3] }
  0x97   : > { %v388_v37 = vsel %vm387_vm2, %v384_v32, %v386_v31  ;;  %v389_v38 = vsel %vm387_vm2, %v386_v31, %v384_v32  ;;  %v768_v27 = vrot.slane %v1031_v13, %v1288_v8 }
  0x98   : > { %v403_v41 = vmul.f32 %v396_v20, %v389_v38  ;;  %v404_v42 = vmul.f32 %v400_v21, %v388_v37  ;;  %1008 = vmatprep.subr.msk.bf16.mxu0 %vm285_vm3, %v280_v33  ;;  %1010 = vmatprep.subr.msk.bf16.mxu1 %vm285_vm3, %v254_v34  ;;  %v287_v43 = vsel %vm285_vm3, %v279_v35, 0  ;;  %v337_v44 = vsel %vm285_vm3, %v253_v36, 0 }
  0x99   : > { %293 = vmatpush1.bf16.msra.mxu0 %v287_v43  ;;  %343 = vmatpush1.bf16.msra.mxu1 %v337_v44  ;;  %v842_v37 = vrot.slane %v1035_v28, %v1286_v7  ;;  %v846_v38 = vrot.slane %v1035_v28, %v1288_v8 }
  0x9a   : > { %v407_v48 = vpack.c.bf16 %v403_v41, %v403_v41  ;;  %v408_v49 = vpack.c.bf16 %v404_v42, %v404_v42  ;;  %v464_v50 = vpop.permute.xlu1 %463  ;;  %v462_v51 = vpop.permute.xlu0 %461 }
  0x9b   : > { %v466_v52 = vsel %vm465_vm4, %v462_v51, %v464_v50  ;;  %v467_v53 = vsel %vm465_vm4, %v464_v50, %v462_v51  ;;  %v1028_v50 = vld [vmem:[%s1472_s2 + $0x18] sm:$0xf]  ;;  %v1032_v51 = vld [vmem:[%s1472_s2 + $0x1c] sm:$0xf] }
  0x9c   : > { %1011 = vmatmul.mubr.msk.bf16.vlgmr.msra.gmra.mrb[0].mxu1 %vm281_vm5, %v252_v46  ;;  %1009 = vmatmul.mubr.msk.bf16.vlgmr.msra.gmra.mrb[0].mxu0 %vm281_vm5, %v1007_v47  ;;  %v481_v56 = vmul.f32 %v474_v39, %v467_v53  ;;  %v482_v57 = vmul.f32 %v478_v40, %v466_v52  ;;  %v413_v58 = vsel %vm285_vm3, %v407_v48, 0  ;;  %v1020_v39 = vld [vmem:[%s1472_s2 + $0x10] sm:$0xf]  ;;  %v1024_v40 = vld [vmem:[%s1472_s2 + $0x14] sm:$0xf] }
  0x9d   : > { %1014 = vmatprep.subr.msk.bf16.mxu0 %vm285_vm3, %v408_v49  ;;  %450 = vmatprep.mubr.bf16.mxu0 %v1160_v1  ;;  %v1036_v53 = vld [vmem:[%s1472_s2 + $0x20] sm:$0xf] }
  0x9e   : > { %v485_v61 = vpack.c.bf16 %v481_v56, %v481_v56  ;;  %v486_v62 = vpack.c.bf16 %v482_v57, %v482_v57  ;;  %419 = vmatpush1.bf16.msra.mxu0 %v413_v58  ;;  %v598_v63 = vpop.permute.xlu1 %597  ;;  %v596_v2 = vpop.permute.xlu0 %595  ;;  %528 = vmatprep.mubr.bf16.mxu1 %v1160_v1 }
  0x9f   : > { %v600_v4 = vsel %vm599_vm6, %v596_v2, %v598_v63  ;;  %v601_v5 = vsel %vm599_vm6, %v598_v63, %v596_v2  ;;  %1021 = vmatprep.subr.msk.bf16.mxu0 %vm285_vm3, %v542_v55 }
  0xa0   : > { %1018 = vmatprep.subr.msk.bf16.mxu1 %vm285_vm3, %v486_v62  ;;  %v615_v10 = vmul.f32 %v608_v54, %v600_v4  ;;  %v616_v11 = vmul.f32 %v612_v59, %v601_v5  ;;  %v491_v12 = vsel %vm285_vm3, %v485_v61, 0 }
  0xa1   : > { %497 = vmatpush1.bf16.msra.mxu1 %v491_v12 }
  0xa2   : > { %v619_v16 = vpack.c.bf16 %v615_v10, %v615_v10  ;;  %v620_v17 = vpack.c.bf16 %v616_v11, %v616_v11  ;;  %v676_v19 = vpop.permute.xlu1 %675  ;;  %v674_v20 = vpop.permute.xlu0 %673 }
  0xa3   : > { %v678_v21 = vsel %vm677_vm7, %v674_v20, %v676_v19  ;;  %v679_v22 = vsel %vm677_vm7, %v676_v19, %v674_v20 }
  0xa4   : > { %1015 = vmatmul.mubr.msk.bf16.vlgmr.msra.gmra.mrb[4].mxu0 %vm281_vm5, %v1013_v14  ;;  %1019 = vmatmul.mubr.msk.bf16.vlgmr.msra.gmra.mrb[4].mxu1 %vm281_vm5, %v1017_v15  ;;  %v693_v24 = vmul.f32 %v686_v9, %v678_v21  ;;  %v694_v25 = vmul.f32 %v690_v0, %v679_v22  ;;  %v625_v26 = vsel %vm285_vm3, %v619_v16, 0 }
  0xa5   : > { %553 = vmatpush1.bf16.msra.mxu0 %v547_v18  ;;  %1025 = vmatprep.subr.msk.bf16.mxu1 %vm285_vm3, %v620_v17 }
  0xa6   : > { %v697_v29 = vpack.c.bf16 %v693_v24, %v693_v24  ;;  %v698_v30 = vpack.c.bf16 %v694_v25, %v694_v25  ;;  %631 = vmatpush1.bf16.msra.mxu1 %v625_v26  ;;  %v754_v31 = vpop.permute.xlu1 %753  ;;  %v752_v32 = vpop.permute.xlu0 %751  ;;  %584 = vmatprep.mubr.bf16.mxu0 %v1160_v1 }
  0xa7   : > { %v756_v33 = vsel %vm755_vm8, %v752_v32, %v754_v31  ;;  %v757_v34 = vsel %vm755_vm8, %v754_v31, %v752_v32  ;;  %662 = vmatprep.mubr.bf16.mxu1 %v1160_v1 }
  0xa8   : > { %v771_v35 = vmul.f32 %v764_v23, %v756_v33  ;;  %v772_v36 = vmul.f32 %v768_v27, %v757_v34  ;;  %1029 = vmatprep.subr.msk.bf16.mxu0 %vm285_vm3, %v698_v30  ;;  %v703_v6 = vsel %vm285_vm3, %v697_v29, 0 }
  0xaa   : > { %v775_v41 = vpack.c.bf16 %v771_v35, %v771_v35  ;;  %v776_v42 = vpack.c.bf16 %v772_v36, %v772_v36  ;;  %v832_v43 = vpop.permute.xlu1 %831  ;;  %v830_v44 = vpop.permute.xlu0 %829 }
  0xab   : > { %v834_v45 = vsel %vm833_vm9, %v830_v44, %v832_v43  ;;  %v835_v46 = vsel %vm833_vm9, %v832_v43, %v830_v44  ;;  %v918_v43 = vstv %s915_s26 }
  0xac   : > { %1022 = vmatmul.mubr.msk.bf16.vlgmr.msra.gmra.mrb[8].mxu0 %vm281_vm5, %v1020_v39  ;;  %1026 = vmatmul.mubr.msk.bf16.vlgmr.msra.gmra.mrb[8].mxu1 %vm281_vm5, %v1024_v40  ;;  %v849_v7 = vmul.f32 %v842_v37, %v834_v45  ;;  %v850_v8 = vmul.f32 %v846_v38, %v835_v46  ;;  %v781_v47 = vsel %vm285_vm3, %v775_v41, 0 }
  0xad   : > { %709 = vmatpush1.bf16.msra.mxu0 %v703_v6  ;;  %1033 = vmatprep.subr.msk.bf16.mxu1 %vm285_vm3, %v776_v42 }
  0xae   : > { %v853_v48 = vpack.c.bf16 %v849_v7, %v849_v7  ;;  %v854_v49 = vpack.c.bf16 %v850_v8, %v850_v8  ;;  %787 = vmatpush1.bf16.msra.mxu1 %v781_v47  ;;  %740 = vmatprep.mubr.bf16.mxu0 %v1160_v1 }
  0xaf   : > { %818 = vmatprep.mubr.bf16.mxu1 %v1160_v1 }
  0xb0   : > { %1037 = vmatprep.subr.msk.bf16.mxu0 %vm285_vm3, %v854_v49  ;;  %v859_v52 = vsel %vm285_vm3, %v853_v48, 0 }
  0xb4   : > { %1030 = vmatmul.mubr.msk.bf16.vlgmr.msra.gmra.mrb[12].mxu0 %vm281_vm5, %v1028_v50  ;;  %1034 = vmatmul.mubr.msk.bf16.vlgmr.msra.gmra.mrb[12].mxu1 %vm281_vm5, %v1032_v51 }
  0xb5   : > { %865 = vmatpush1.bf16.msra.mxu0 %v859_v52  ;;  %896 = vmatprep.mubr.bf16.mxu0 %v1160_v1 }
  0xbb   : > { %v911_v40 = vpop.permute.xlu0 %910 }
  0xbc   : > { %1038 = vmatmul.mubr.msk.bf16.vlgmr.msra.gmra.mrb[16].mxu0 %vm281_vm5, %v1036_v53 }
 0x16f   : > { %v326_v54 = vpop.f32.mrb[0].mxu0  ;;  %v376_v55 = vpop.f32.mrb[0].mxu1 }
 0x170   : > { %v377_v56 = vadd.f32 %v376_v55, %v326_v54  ;;  %v328_v57 = vpop.f32.mrb[1].mxu0  ;;  %v378_v58 = vpop.f32.mrb[1].mxu1 }
 0x171   : > { %v379_v59 = vadd.f32 %v378_v58, %v328_v57  ;;  %v330_v60 = vpop.f32.mrb[2].mxu0  ;;  %v380_v61 = vpop.f32.mrb[2].mxu1 }
 0x172   : > { %v331_v62 = vpop.f32.mrb[3].mxu0  ;;  %v381_v63 = vpop.f32.mrb[3].mxu1 }
 0x177   : > { %v452_v2 = vpop.f32.mrb[4].mxu0  ;;  %v530_v3 = vpop.f32.mrb[4].mxu1 }
 0x178   : > { %v459_v4 = vadd.f32 %v452_v2, %v377_v56  ;;  %v454_v1 = vpop.f32.mrb[5].mxu0  ;;  %v532_v5 = vpop.f32.mrb[5].mxu1 }
 0x179   : > { %v460_v9 = vadd.f32 %v454_v1, %v379_v59  ;;  %v456_v10 = vpop.f32.mrb[6].mxu0  ;;  %v534_v11 = vpop.f32.mrb[6].mxu1 }
 0x17a   : > { %v537_v12 = vadd.f32 %v530_v3, %v459_v4  ;;  %v457_v0 = vpop.f32.mrb[7].mxu0  ;;  %v535_v13 = vpop.f32.mrb[7].mxu1 }
 0x17b   : > { %v538_v14 = vadd.f32 %v532_v5, %v460_v9 }
 0x17f   : > { %v586_v15 = vpop.f32.mrb[8].mxu0  ;;  %v664_v16 = vpop.f32.mrb[8].mxu1 }
 0x180   : > { %v593_v17 = vadd.f32 %v586_v15, %v537_v12  ;;  %v588_v18 = vpop.f32.mrb[9].mxu0  ;;  %v666_v19 = vpop.f32.mrb[9].mxu1 }
 0x181   : > { %v594_v20 = vadd.f32 %v588_v18, %v538_v14  ;;  %v590_v21 = vpop.f32.mrb[10].mxu0  ;;  %v668_v22 = vpop.f32.mrb[10].mxu1 }
 0x182   : > { %v671_v23 = vadd.f32 %v664_v16, %v593_v17  ;;  %v591_v24 = vpop.f32.mrb[11].mxu0  ;;  %v669_v25 = vpop.f32.mrb[11].mxu1 }
 0x183   : > { %v672_v26 = vadd.f32 %v666_v19, %v594_v20 }
 0x187   : > { %v742_v27 = vpop.f32.mrb[12].mxu0  ;;  %v820_v28 = vpop.f32.mrb[12].mxu1 }
 0x188   : > { %v749_v29 = vadd.f32 %v742_v27, %v671_v23  ;;  %v744_v30 = vpop.f32.mrb[13].mxu0  ;;  %v822_v31 = vpop.f32.mrb[13].mxu1 }
 0x189   : > { %v750_v32 = vadd.f32 %v744_v30, %v672_v26  ;;  %v746_v33 = vpop.f32.mrb[14].mxu0  ;;  %v824_v34 = vpop.f32.mrb[14].mxu1 }
 0x18a   : > { %v827_v35 = vadd.f32 %v820_v28, %v749_v29  ;;  %v747_v36 = vpop.f32.mrb[15].mxu0  ;;  %v825_v37 = vpop.f32.mrb[15].mxu1 }
 0x18b   : > { %v828_v38 = vadd.f32 %v822_v31, %v750_v32 }
 0x18f   : > { %v898_v39 = vpop.f32.mrb[16].mxu0 }
 0x190   : > { %v905_v41 = vadd.f32 %v898_v39, %v827_v35  ;;  %v900_v42 = vpop.f32.mrb[17].mxu0 }
 0x191   : > { %v906_v6 = vadd.f32 %v900_v42, %v828_v38  ;;  %v902_v44 = vpop.f32.mrb[18].mxu0 }
 0x192   : > { %v913_v45 = vadd.f32 %v911_v40, %v905_v41  ;;  %v903_v46 = vpop.f32.mrb[19].mxu0 }
 0x193   : > { %v914_v7 = vadd.f32 %v911_v40, %v906_v6 }
 0x194   : > { %vm916_vm10 = vcmp.ge.f32.partialorder %v913_v45, 0.0  ;;  %v919_v8 = vmul.f32 %v918_v43, %v913_v45 }
 0x195   : > { %vm917_vm11 = vcmp.ge.f32.partialorder %v914_v7, 0.0  ;;  %v920_v47 = vmul.f32 %v918_v43, %v914_v7 }
 0x196   : > { %v921_v48 = vsel %vm916_vm10, %v913_v45, %v919_v8 }
 0x197   : > { %v922_v49 = vsel %vm917_vm11, %v914_v7, %v920_v47  ;;  %923 = vst [vmem:[%s218_s8] sm:$0xff] %v921_v48 }
 0x198   : > { %924 = vst [vmem:[%s218_s8 + $0x8] sm:$0xff] %v922_v49 }
 0x199   : > { %1109 = shalt.err (!%p1106_p3)
}
 0x19a   : > { %s1110_s17 = scalar_lea.hbm %s1428_s12, 256  ;;  %s1114_s24 = scalar_lea.hbm %s1475_s5, 512 }
 0x19b   : > { %p1111_p4 = scmp.ne.s32.totalorder %s1428_s12, %s1110_s17  ;;  %p1115_p9 = scmp.lt.u32.totalorder %s1428_s12, %s1475_s5 }
 0x19c   : > { %p1116_p10 = scmp.lt.u32.totalorder %s1114_s24, %s1110_s17  ;;  %p1118_p12 = scmp.lt.u32.totalorder %s1110_s17, %s1428_s12 }
 0x19d   : > { %p1112_p7 = pnand %p1111_p4, %p1241_p5 }
 0x19e   : > { %p1117_p11 = por %p1116_p10, %p1115_p9 }
 0x19f   : > { %p1113_p8 = pneg %p1112_p7 }
 0x1a0   : > { %p1119_p13 = por %p1118_p12, %p1117_p11 }
 0x1a2   : > { %p1120_p0 = pnand %p1119_p13, %p1113_p8 }
 0x1a4   : > { %1123 = shalt.err (!%p1120_p0)
}
 0x1a5   : > { %1046 = dma.vmem_to_hbm [thread:$0]  (%p1241_p5), %s1430_s9, 256, %s1428_s12, %s926_s4  }
 0x1a6 PF: > { %p1052_p1 = scmp.ge.s32.totalorder %s1158_s23, 2  ;;  %s952_s6 = sand.u32 1, %s1146_s20  }
 0x1a7   : > { %s953_s7 = scalar_lea.sflag [#allocation4], %s952_s6 }
 0x1a8   : > { %p1049_p2 = pnand %p1052_p1, %p1245_p6 }
 0x1aa   : > { %1141 = dma.done.wait (!%p1049_p2), %s953_s7, 256  }
 0x1ab   : > { %1143 = vsyncadd (!%p1049_p2), %s953_s7, 4294967040  ;;  %p16_p3 = scmp.ge.s32.totalorder %s1228_s25, 4   ;;  %s1478_s20 = smov %s1150_s21 }
 0x1ac   : > { %s1479_s21 = smov %s1154_s22  ;;  %s1480_s22 = smov %s1239_s28 }
 0x1ad   : > { %s1481_s23 = smov %s1228_s25  ;;  %18 = sbr.rel (!%p16_p3) target bundleno = 5 (0x5), region = 90 }
 0x1b4   :  { %958 = vsyncpa [#allocation4], 1 }
 0x1b5   :  { %960 = vsyncpa [#allocation4 + $0x1], 1 }

</bundles_post_ra>
